<compile_context>
chip_gen: v6e
topology: v6e:2x2x1
jax: 0.10.0
libtpu: 0.0.40
codegen_flags: <defaults>
</compile_context>

<pallas_src>
import functools

import jax
import jax.numpy as jnp
from jax.experimental import pallas as pl
from jax.experimental.pallas import tpu as pltpu

HIDDEN = 44          # f_hidden_size (even; Haar halves it to 22)
HALF = HIDDEN // 2   # 22, matches nn.Linear(22, 22)
EPS = 1e-12          # matches the module's LayerNorm(eps=1e-12)


def _round_up(n, m):
    return ((n + m - 1) // m) * m


def _haar_matrices():
    """Orthonormal Haar analysis matrices El, Eh of shape (HIDDEN, HALF)."""
    inv = 1.0 / jnp.sqrt(2.0)
    idx = jnp.arange(HIDDEN)
    pair = idx // 2
    onehot = (jnp.arange(HALF)[None, :] == pair[:, None]).astype(jnp.float32)
    el = onehot * inv
    sign = jnp.where(idx % 2 == 0, 1.0, -1.0).astype(jnp.float32)
    eh = el * sign[:, None]
    return el, eh


def _wavelet_kernel(x_ref, m_ref, c_ref, g_ref, beta_ref, o_ref):
    """One row-tile: h = x + (x @ M + c); LayerNorm(h)."""
    x = x_ref[...].astype(jnp.float32)                            # (TM, 44)

    # Fused DWT -> low-freq Linear -> iDWT (precomputed M, c in the wrapper).
    # bf16 MXU operands, f32 accumulate.
    recon = jnp.dot(x.astype(jnp.bfloat16), m_ref[...],
                    preferred_element_type=jnp.float32) + c_ref[...]

    # dropout is identity in eval mode
    # TODO(synk): training-mode dropout not implemented (the algebraic fusion
    # above is only valid while dropout is identity).

    h = recon + x                                                 # residual (f32)
    u = jnp.mean(h, axis=-1, keepdims=True)
    d = h - u
    s = jnp.mean(d * d, axis=-1, keepdims=True)
    hn = d * jax.lax.rsqrt(s + EPS)
    o_ref[...] = (g_ref[...] * hn + beta_ref[...]).astype(o_ref.dtype)


@functools.partial(jax.jit, static_argnames=("tile_m",))
def wavelet_layer(x, w, b, ln_w, ln_b, tile_m=1024):
    """x: (B, S, HIDDEN) float32.  Returns (B, S, HIDDEN)."""
    B, S, H = x.shape
    assert H == HIDDEN
    R = B * S

    # Pick a row tile (multiple of 8, capped by the actual row count) and pad
    # the flattened rows so the grid divides evenly.
    tm = min(tile_m, _round_up(max(R, 1), 8))
    Rp = _round_up(R, tm)

    xr = x.reshape(R, H)
    if Rp != R:
        xr = jnp.pad(xr, ((0, Rp - R), (0, 0)))

    # Fold DWT -> Linear -> iDWT into a single matrix + bias.
    el, eh = _haar_matrices()
    m = (el @ w.T @ el.T + eh @ eh.T).astype(jnp.bfloat16)        # (44, 44)
    c = (b @ el.T).reshape(1, H).astype(jnp.float32)              # (1, 44)
    g2 = ln_w.reshape(1, H).astype(jnp.float32)
    beta2 = ln_b.reshape(1, H).astype(jnp.float32)

    full = lambda shape: pl.BlockSpec(shape, lambda i: (0, 0))

    out = pl.pallas_call(
        _wavelet_kernel,
        out_shape=jax.ShapeDtypeStruct((Rp, H), x.dtype),
        grid_spec=pltpu.PrefetchScalarGridSpec(
            num_scalar_prefetch=0,
            grid=(Rp // tm,),
            in_specs=[
                pl.BlockSpec((tm, H), lambda i: (i, 0)),          # x rows
                full((H, H)),                                     # fused M (bf16)
                full((1, H)),                                     # fused bias c
                full((1, H)),                                     # LN weight
                full((1, H)),                                     # LN bias
            ],
            out_specs=pl.BlockSpec((tm, H), lambda i: (i, 0)),
        ),
        compiler_params=pltpu.CompilerParams(
            dimension_semantics=("parallel",)),
    )(xr, m, c, g2, beta2)
    return out[:R].reshape(B, S, H)


def wavelet_layer_ref(x, w, b, ln_w, ln_b):
    """Pure-JAX un-fused reference (f32 path) for verification."""
    el, eh = _haar_matrices()
    yl = x @ el
    yh = x @ eh
    yl_t = yl @ w.T + b
    recon = yl_t @ el.T + yh @ eh.T
    h = recon + x
    u = jnp.mean(h, axis=-1, keepdims=True)
    s = jnp.mean((h - u) ** 2, axis=-1, keepdims=True)
    hn = (h - u) / jnp.sqrt(s + EPS)
    return ln_w * hn + ln_b


if __name__ == "__main__":
    key = jax.random.PRNGKey(0)
    k_x, k_w, k_b = jax.random.split(key, 3)

    B, S = 2, 8
    x = jax.random.normal(k_x, (B, S, HIDDEN), dtype=jnp.float32)

    # Deterministic parameter init (shapes from the module's __init__).
    bound = 1.0 / jnp.sqrt(float(HALF))
    w = jax.random.uniform(k_w, (HALF, HALF), jnp.float32, -bound, bound)
    b = jax.random.uniform(k_b, (HALF,), jnp.float32, -bound, bound)
    ln_w = jnp.ones((HIDDEN,), jnp.float32)   # LayerNorm weight
    ln_b = jnp.zeros((HIDDEN,), jnp.float32)  # LayerNorm bias

    out = wavelet_layer(x, w, b, ln_w, ln_b)
    out = jax.block_until_ready(out)

    ref = wavelet_layer_ref(x, w, b, ln_w, ln_b)
    assert out.shape == (B, S, HIDDEN)
    assert jnp.all(jnp.isfinite(out)), "non-finite output"
    # Tolerance loosened vs. the f32 reference because the kernel feeds the
    # fused matmul bf16 operands (f32 accumulate), per the perf review.
    assert jnp.allclose(out, ref, atol=5e-2, rtol=5e-2), "mismatch vs reference"

    print("KERNEL_OK")
</pallas_src>

<mosaic_0001>
module attributes {stable_mosaic.version = 11 : i64} {
  func.func @_wavelet_kernel(%arg0: i32, %arg1: memref<16x44xf32, #tpu.memory_space<vmem>>, %arg2: memref<44x44xbf16, #tpu.memory_space<vmem>>, %arg3: memref<1x44xf32, #tpu.memory_space<vmem>>, %arg4: memref<1x44xf32, #tpu.memory_space<vmem>>, %arg5: memref<1x44xf32, #tpu.memory_space<vmem>>, %arg6: memref<16x44xf32, #tpu.memory_space<vmem>>) attributes {dimension_semantics = [#tpu.dimension_semantics<parallel>], iteration_bounds = array<i64: 1>, scalar_prefetch = 0 : i64, scratch_operands = 0 : i64, tpu.core_type = #tpu.core_type<tc>, window_params = [{transform_indices = @transform_0, window_bounds = array<i64: 16, 44>}, {pipeline_mode = #tpu.pipeline_mode<synchronous>, transform_indices = @transform_1, window_bounds = array<i64: 44, 44>}, {pipeline_mode = #tpu.pipeline_mode<synchronous>, transform_indices = @transform_2, window_bounds = array<i64: 1, 44>}, {pipeline_mode = #tpu.pipeline_mode<synchronous>, transform_indices = @transform_3, window_bounds = array<i64: 1, 44>}, {pipeline_mode = #tpu.pipeline_mode<synchronous>, transform_indices = @transform_4, window_bounds = array<i64: 1, 44>}, {transform_indices = @transform_5, window_bounds = array<i64: 16, 44>}]} {
    %c0 = arith.constant 0 : index
    %c0_0 = arith.constant 0 : index
    %0 = vector.load %arg1[%c0, %c0_0] : memref<16x44xf32, #tpu.memory_space<vmem>>, vector<16x44xf32>
    %1 = arith.truncf %0 : vector<16x44xf32> to vector<16x44xbf16>
    %c0_1 = arith.constant 0 : index
    %c0_2 = arith.constant 0 : index
    %2 = vector.load %arg2[%c0_1, %c0_2] : memref<44x44xbf16, #tpu.memory_space<vmem>>, vector<44x44xbf16>
    %cst = arith.constant dense<0.000000e+00> : vector<16x44xf32>
    %3 = tpu.matmul %1, %2, %cst {dimension_numbers = #tpu.dot_dimension_numbers<[1], [0], [0], [1], [0, 0, 1, 1], [], []>} : vector<16x44xbf16>, vector<44x44xbf16>, vector<16x44xf32> -> vector<16x44xf32>
    %c0_3 = arith.constant 0 : index
    %c0_4 = arith.constant 0 : index
    %4 = vector.load %arg3[%c0_3, %c0_4] : memref<1x44xf32, #tpu.memory_space<vmem>>, vector<1x44xf32>
    %5 = vector.broadcast %4 : vector<1x44xf32> to vector<16x44xf32>
    %6 = arith.addf %3, %5 : vector<16x44xf32>
    %7 = arith.addf %6, %0 : vector<16x44xf32>
    %cst_5 = arith.constant dense<0.000000e+00> : vector<16xf32>
    %8 = vector.multi_reduction <add>, %7, %cst_5 [1] : vector<16x44xf32> to vector<16xf32>
    %9 = vector.shape_cast %8 : vector<16xf32> to vector<16x1xf32>
    %cst_6 = arith.constant 4.400000e+01 : f32
    %10 = vector.broadcast %cst_6 : f32 to vector<16x1xf32>
    %11 = arith.divf %9, %10 : vector<16x1xf32>
    %12 = vector.broadcast %11 : vector<16x1xf32> to vector<16x44xf32>
    %13 = arith.subf %7, %12 : vector<16x44xf32>
    %14 = arith.mulf %13, %13 : vector<16x44xf32>
    %cst_7 = arith.constant dense<0.000000e+00> : vector<16xf32>
    %15 = vector.multi_reduction <add>, %14, %cst_7 [1] : vector<16x44xf32> to vector<16xf32>
    %16 = vector.shape_cast %15 : vector<16xf32> to vector<16x1xf32>
    %cst_8 = arith.constant 4.400000e+01 : f32
    %17 = vector.broadcast %cst_8 : f32 to vector<16x1xf32>
    %18 = arith.divf %16, %17 : vector<16x1xf32>
    %cst_9 = arith.constant 9.99999996E-13 : f32
    %19 = vector.broadcast %cst_9 : f32 to vector<16x1xf32>
    %20 = arith.addf %18, %19 : vector<16x1xf32>
    %21 = math.rsqrt %20 : vector<16x1xf32>
    %22 = vector.broadcast %21 : vector<16x1xf32> to vector<16x44xf32>
    %23 = arith.mulf %13, %22 : vector<16x44xf32>
    %c0_10 = arith.constant 0 : index
    %c0_11 = arith.constant 0 : index
    %24 = vector.load %arg4[%c0_10, %c0_11] : memref<1x44xf32, #tpu.memory_space<vmem>>, vector<1x44xf32>
    %25 = vector.broadcast %24 : vector<1x44xf32> to vector<16x44xf32>
    %26 = arith.mulf %25, %23 : vector<16x44xf32>
    %c0_12 = arith.constant 0 : index
    %c0_13 = arith.constant 0 : index
    %27 = vector.load %arg5[%c0_12, %c0_13] : memref<1x44xf32, #tpu.memory_space<vmem>>, vector<1x44xf32>
    %28 = vector.broadcast %27 : vector<1x44xf32> to vector<16x44xf32>
    %29 = arith.addf %26, %28 : vector<16x44xf32>
    %c0_14 = arith.constant 0 : index
    %c0_15 = arith.constant 0 : index
    %30 = vector.load %arg6[%c0_14, %c0_15] : memref<16x44xf32, #tpu.memory_space<vmem>>, vector<16x44xf32>
    tpu.vector_store %arg6[%c0_14, %c0_15], %29 {strides = array<i32>} : memref<16x44xf32, #tpu.memory_space<vmem>>, vector<16x44xf32>,
    return
  }
  func.func @transform_0(%arg0: i32) -> (i32, i32) {
    %c0_i32 = arith.constant 0 : i32
    %c0_i32_0 = arith.constant 0 : i32
    return %arg0, %c0_i32 : i32, i32
  }
  func.func @transform_1(%arg0: i32) -> (i32, i32) {
    %c0_i32 = arith.constant 0 : i32
    %c0_i32_0 = arith.constant 0 : i32
    %c0_i32_1 = arith.constant 0 : i32
    return %c0_i32, %c0_i32_0 : i32, i32
  }
  func.func @transform_2(%arg0: i32) -> (i32, i32) {
    %c0_i32 = arith.constant 0 : i32
    %c0_i32_0 = arith.constant 0 : i32
    %c0_i32_1 = arith.constant 0 : i32
    return %c0_i32, %c0_i32_0 : i32, i32
  }
  func.func @transform_3(%arg0: i32) -> (i32, i32) {
    %c0_i32 = arith.constant 0 : i32
    %c0_i32_0 = arith.constant 0 : i32
    %c0_i32_1 = arith.constant 0 : i32
    return %c0_i32, %c0_i32_0 : i32, i32
  }
  func.func @transform_4(%arg0: i32) -> (i32, i32) {
    %c0_i32 = arith.constant 0 : i32
    %c0_i32_0 = arith.constant 0 : i32
    %c0_i32_1 = arith.constant 0 : i32
    return %c0_i32, %c0_i32_0 : i32, i32
  }
  func.func @transform_5(%arg0: i32) -> (i32, i32) {
    %c0_i32 = arith.constant 0 : i32
    %c0_i32_0 = arith.constant 0 : i32
    return %arg0, %c0_i32 : i32, i32
  }
}

</mosaic_0001>

<bundles_post_ra>
// kernel: wavelet_layer.1
= control target key start
LH: loop header
LB: loop body
LE: loop exit
PB: predicated region body
PF: predicated region fallthrough
CT: control target
= control target key end

     0   :  { %vm59_vm0 = vcmask 1045504   ;;  %v224_v0 = vmov 0.0   ;;  %vm225_vm1 = vmmov 0   ;;  %s293_s0 = inlined_call_operand.vmem [shape: f32[16,44], index: 0, kind: input, shape index: {}]   ;;  %s294_s1 = inlined_call_operand.vmem [shape: bf16[44,44], index: 1, kind: input, shape index: {}]   ;;  %s295_s2 = inlined_call_operand.vmem [shape: f32[1,44], index: 2, kind: input, shape index: {}]   ;;  %s296_s3 = inlined_call_operand.vmem [shape: f32[1,44], index: 3, kind: input, shape index: {}]   ;;  %s297_s4 = inlined_call_operand.vmem [shape: f32[1,44], index: 4, kind: input, shape index: {}]   ;;  %s298_s5 = inlined_call_operand.hbm [shape: f32[16,44], index: 5, kind: output, shape index: {}]  }
   0x1   :  { %180 = vmatprep.subr.bf16.mxu0 %v224_v0  ;;  %v195_v1 = vld [vmem:[%s294_s1 + $0x10] sm:$0x3f]   ;;  %186 = vmatprep.mubr.msk.bf16.mxu0 %vm225_vm1, %v224_v0  ;;  %v196_v3 = vld [vmem:[%s294_s1 + $0x8] sm:$0xff]  }
   0x2   :  { %v61_v2 = vsel %vm59_vm0, %v195_v1, 0 }
   0x3   :  { %181 = vmatpush3.bf16.msra.mxu0 %v61_v2 }
   0x4   :  { %10 = vsyncpa [#allocation3], 0  ;;  %182 = vmatprep.subr.bf16.mxu0 %v224_v0  ;;  %v197_v4 = vld [vmem:[%s294_s1] sm:$0xff]   ;;  %v23_v6 = vld [vmem:[%s293_s0 + $0x8] sm:$0xff]  ;;  %vm55_vm2 = vcmask 359424   ;;  %s226_s6 = smov [#allocation2]  }
   0x5   :  { %v22_v5 = vld [vmem:[%s293_s0] sm:$0xff]  ;;  %s158_s7 = sshll.u32 %s226_s6, 4  ;;  %s159_s7 = int_to_ptr.vmem [resolvable:$true] %s158_s7 }
   0x6   :  { %v24_v7 = vpack.c.bf16 %v23_v6, %v22_v5  ;;  %v169_v8 = vld [vmem:[%s295_s2] ss:$0 sm:$0xff]  ;;  %s202_s8 = scalar_lea.vmem %s159_s7, 256  ;;  %p207_p1 = scmp.lt.s32.totalorder %s159_s7, %s159_s7 }
   0x7   :  { %183 = vmatpush3.bf16.msra.mxu0 %v196_v3  ;;  %v174_v36 = vld [vmem:[%s296_s3] ss:$0 sm:$0xff]  ;;  %p203_p0 = scmp.ne.s32.totalorder %s159_s7, %s202_s8  ;;  %p208_p2 = scmp.lt.s32.totalorder %s202_s8, %s202_s8 }
   0x8   :  { %184 = vmatprep.subr.bf16.mxu0 %v224_v0  ;;  %v175_v38 = vld [vmem:[%s297_s4] ss:$0 sm:$0xff] }
   0x9   :  { %p209_p3 = por %p208_p2, %p207_p1 }
   0xb   :  { %185 = vmatpush3.bf16.msra.mxu0 %v197_v4  ;;  %p210_p4 = pnand %p209_p3, %p203_p0 }
   0xe   :  { %187 = vmatmul.mubr.msk.bf16.vlgmr.msra.gmra.mxu0 %vm55_vm2, %v24_v7 }
  0xce   :  { %v97_v9 = vpop.f32.mrf.mxu0 }
  0xcf   :  { %v98_v10 = vadd.f32 %v169_v8, %v97_v9 }
  0xd0   :  { %v188_v11 = vpop.f32.mrf.mxu0 }
  0xd1   :  { %v104_v12 = vadd.f32 %v98_v10, %v22_v5 }
  0xd2   :  { %v100_v13 = vpop.f32.mrf.mxu0 }
  0xd3   :  { %v101_v14 = vadd.f32 %v169_v8, %v100_v13  ;;  %v106_v15 = vsel %vm55_vm2, %v104_v12, 0.0 }
  0xd4   :  { %107 = vadd.xlane.f32.xlu0 %v106_v15  ;;  %v189_v16 = vpop.f32.mrf.mxu0 }
  0xd5   :  { %v105_v17 = vadd.f32 %v101_v14, %v23_v6 }
  0xd7   :  { %v109_v18 = vsel %vm55_vm2, %v105_v17, 0.0 }
  0xd8   :  { %110 = vadd.xlane.f32.xlu0 %v109_v18 }
 0x15d   :  { %v108_v19 = vpop.xlane.xlu0 %107 }
 0x15e   :  { %v113_v20 = vmul.f32 0.022727273, %v108_v19 }
 0x160   :  { %v115_v21 = vsub.f32 %v104_v12, %v113_v20 }
 0x161   :  { %v111_v22 = vpop.xlane.xlu0 %110 }
 0x162   :  { %v114_v23 = vmul.f32 0.022727273, %v111_v22  ;;  %v117_v24 = vmul.f32 %v115_v21, %v115_v21 }
 0x164   :  { %v116_v25 = vsub.f32 %v105_v17, %v114_v23  ;;  %v119_v26 = vsel %vm55_vm2, %v117_v24, 0.0 }
 0x165   :  { %120 = vadd.xlane.f32.xlu1 %v119_v26 }
 0x166   :  { %v118_v27 = vmul.f32 %v116_v25, %v116_v25 }
 0x168   :  { %v122_v28 = vsel %vm55_vm2, %v118_v27, 0.0 }
 0x169   :  { %123 = vadd.xlane.f32.xlu1 %v122_v28 }
 0x1ee   :  { %v121_v29 = vpop.xlane.xlu1 %120 }
 0x1ef   :  { %v125_v30 = vmul.f32 0.022727273, %v121_v29 }
 0x1f1   :  { %v127_v31 = vadd.f32 1e-12, %v125_v30 }
 0x1f2   :  { %v124_v32 = vpop.xlane.xlu1 %123 }
 0x1f3   :  { %198 = vrsqrt.f32 %v127_v31  ;;  %v126_v33 = vmul.f32 0.022727273, %v124_v32 }
 0x1f5   :  { %v128_v34 = vadd.f32 1e-12, %v126_v33 }
 0x1f7   :  { %200 = vrsqrt.f32 %v128_v34 }
 0x200   :  { %v199_v35 = vpop.eup %198 }
 0x201   :  { %v131_v37 = vmul.f32 %v199_v35, %v115_v21 }
 0x203   :  { %v140_v39 = vmul.f32 %v174_v36, %v131_v37 }
 0x204   :  { %v201_v40 = vpop.eup %200 }
 0x205   :  { %v132_v41 = vmul.f32 %v201_v40, %v116_v25  ;;  %v149_v42 = vadd.f32 %v175_v38, %v140_v39 }
 0x207   :  { %v141_v43 = vmul.f32 %v174_v36, %v132_v41  ;;  %151 = vst.msk [vmem:[#allocation2] sm:$0xff] %vm55_vm2, %v149_v42 }
 0x209   :  { %v150_v44 = vadd.f32 %v175_v38, %v141_v43 }
 0x20b   :  { %152 = vst.msk [vmem:[#allocation2 + $0x8] sm:$0xff] %vm55_vm2, %v150_v44 }
 0x20c   :  { %213 = shalt.err (!%p210_p4)
}
 0x20d   :  { %s227_s3 = smov 128   ;;  %s228_s4 = smov 8  }
 0x20e   :  { %164 = dma.vmem_to_hbm [thread:$0]  %s159_s7, 256, %s298_s5, [#allocation3], %s227_s3, %s227_s3, %s228_s4  }
 0x20f   :  { %222 = dma.done.wait [#allocation3], 256  }
 0x210   :  { %223 = vsyncadd [#allocation3], 4294967040 }
 0x211   :  { %168 = vsyncpa [#allocation3], 1 }

</bundles_post_ra>
